<compile_context>
chip_gen: v7x
topology: tpu7x:2x2x1
jax: 0.10.0
libtpu: 0.0.40
codegen_flags: <defaults>
</compile_context>

<pallas_src>
import jax
import jax.numpy as jnp
from jax.experimental import pallas as pl
from jax.experimental.pallas import tpu as pltpu

LANE = 128              # TPU lane width; hidden/output feature dims padded to this
_SPLIT_MIN_ROWS = 256   # split the batch into >=2 tiles only above this many rows


def _round_up(n, m):
    return ((n + m - 1) // m) * m


def _mlp_kernel(x_ref, w0_ref, w_ref, b_ref, o_ref):
    """x_ref : [tile_m, in_p]   bf16  (pipelined input tile)
       w0_ref: [in_p, 128]      bf16  (layer-0 weight, VMEM resident)
       w_ref : [L-1, 128, 128]  bf16  (layers 1..L-1, VMEM resident)
       b_ref : [L, 128]         f32   (biases, VMEM resident)
       o_ref : [tile_m, 128]    bf16  (lane-dense output tile)"""
    n_layers = b_ref.shape[0]

    # Layer 0: narrow-K dot straight off the un-padded input.
    acc = jnp.dot(x_ref[...], w0_ref[...], preferred_element_type=jnp.float32)
    h = jnp.maximum(acc + b_ref[0][None, :], 0.0).astype(jnp.bfloat16)

    # Layers 1..L-1: static unroll, back-to-back 128x128 MXU dots.
    for i in range(1, n_layers):
        acc = jnp.dot(h, w_ref[i - 1], preferred_element_type=jnp.float32)
        acc = acc + b_ref[i][None, :]          # bias add in f32 (v5e-friendly)
        if i < n_layers - 1:
            h = jnp.maximum(acc, 0.0).astype(jnp.bfloat16)  # ReLU + bf16 carry
        else:
            h = acc.astype(o_ref.dtype)        # last layer: no ReLU
    o_ref[...] = h                             # unmasked lane-dense bf16 store


def pack_params(params):
    """params: list of (W [in,out] f32, b [out] f32).  Returns:
       w0_slab [in_p, 128] bf16, w_slab [L-1, 128, 128] bf16, b_slab [L, 128] f32,
       all zero-padded (padding is inert through bias(0)+ReLU)."""
    n = len(params)
    in_size, out0 = params[0][0].shape
    in_p = _round_up(in_size, 16)              # bf16 sublane-friendly

    w0_slab = jnp.zeros((in_p, LANE), jnp.float32)
    w0_slab = w0_slab.at[:in_size, :out0].set(params[0][0])

    w_slab = jnp.zeros((n - 1, LANE, LANE), jnp.float32)
    b_slab = jnp.zeros((n, LANE), jnp.float32)
    b_slab = b_slab.at[0, :out0].set(params[0][1])
    for i in range(1, n):
        w, b = params[i]
        din, dout = w.shape
        w_slab = w_slab.at[i - 1, :din, :dout].set(w)
        b_slab = b_slab.at[i, :dout].set(b)
    return w0_slab.astype(jnp.bfloat16), w_slab.astype(jnp.bfloat16), b_slab


def feed_forward_nn(x, w0_slab, w_slab, b_slab, num_classes, *, tile_m=2048):
    """x: [batch, input_size] f32.  Returns [batch, num_classes] f32."""
    batch, in_size = x.shape
    in_p = w0_slab.shape[0]

    # --- tile selection ---------------------------------------------------
    batch_r = _round_up(batch, 16)             # bf16 sublane-friendly row count
    tile_m = min(tile_m, batch_r)
    # Guarantee >= 2 grid steps when there's enough work so the "parallel"
    # batch axis can be sharded across both v7x TensorCores.
    if batch_r >= _SPLIT_MIN_ROWS and _round_up(batch_r, tile_m) // tile_m < 2:
        tile_m = _round_up((batch_r + 1) // 2, 16)
    batch_p = _round_up(batch_r, tile_m)

    # --- bf16 input with row padding only (no 128-lane padding in HBM) -----
    x_bf = x.astype(jnp.bfloat16)
    pad_rows = batch_p - batch
    pad_cols = in_p - in_size
    if pad_rows or pad_cols:
        x_bf = jnp.pad(x_bf, ((0, pad_rows), (0, pad_cols)))

    grid = (batch_p // tile_m,)
    out_p = pl.pallas_call(
        _mlp_kernel,
        out_shape=jax.ShapeDtypeStruct((batch_p, LANE), jnp.bfloat16),
        grid=grid,
        in_specs=[
            pl.BlockSpec((tile_m, in_p), lambda i: (i, 0)),        # x tile (pipelined)
            pl.BlockSpec(w0_slab.shape, lambda i: (0, 0)),         # layer-0 W, resident
            pl.BlockSpec(w_slab.shape, lambda i: (0, 0, 0)),       # layers 1..5 W, resident
            pl.BlockSpec(b_slab.shape, lambda i: (0, 0)),          # biases, resident
        ],
        out_specs=pl.BlockSpec((tile_m, LANE), lambda i: (i, 0)),  # lane-dense bf16 output
        compiler_params=pltpu.CompilerParams(
            dimension_semantics=("parallel",)),                     # megacore batch split
    )(x_bf, w0_slab, w_slab, b_slab)

    return out_p[:batch, :num_classes].astype(jnp.float32)


def init_params(key, input_size, num_classes=3):
    """Deterministic init matching the PyTorch module's layer shapes.
    Weights stored [in, out] (PyTorch stores [out, in]; forward is x @ W.T + b)."""
    dims = [input_size, 20, 20, 20, 20, 20, num_classes]
    params = []
    for i in range(len(dims) - 1):
        key, wk, bk = jax.random.split(key, 3)
        bound = 1.0 / jnp.sqrt(jnp.float32(dims[i]))
        w = jax.random.uniform(wk, (dims[i], dims[i + 1]), jnp.float32, -bound, bound)
        b = jax.random.uniform(bk, (dims[i + 1],), jnp.float32, -bound, bound)
        params.append((w, b))
    return params


def reference_forward_bf16(x, params):
    """Same mixed-precision recipe as the kernel: bf16 MXU operands, f32 accum,
    f32 bias+ReLU, bf16 inter-layer activations and bf16 final store."""
    h = x.astype(jnp.bfloat16)
    for i, (w, b) in enumerate(params):
        acc = jnp.dot(h, w.astype(jnp.bfloat16),
                      preferred_element_type=jnp.float32) + b.reshape(1, -1)
        if i < len(params) - 1:
            h = jnp.maximum(acc, 0.0).astype(jnp.bfloat16)
        else:
            h = acc.astype(jnp.bfloat16)
    return h.astype(jnp.float32)


def reference_forward_f32(x, params):
    """Pure f32 reference of the original PyTorch forward."""
    h = x
    for i, (w, b) in enumerate(params):
        h = h @ w + b.reshape(1, -1)
        if i < len(params) - 1:
            h = jnp.maximum(h, 0.0)
    return h


if __name__ == "__main__":
    key = jax.random.PRNGKey(0)
    input_size = 16
    batch = 8
    num_classes = 3

    pkey, xkey = jax.random.split(key)
    params = init_params(pkey, input_size, num_classes=num_classes)
    x = jax.random.normal(xkey, (batch, input_size), jnp.float32)

    w0_slab, w_slab, b_slab = pack_params(params)
    out = feed_forward_nn(x, w0_slab, w_slab, b_slab, num_classes)
    out = jax.block_until_ready(out)

    assert out.shape == (batch, num_classes), out.shape

    # Tight check vs a reference using the same bf16 MXU/activation recipe.
    ref_bf16 = reference_forward_bf16(x, params)
    assert jnp.allclose(out, ref_bf16, atol=5e-3, rtol=5e-3), "mismatch vs bf16 reference"

    # Loose sanity check vs the pure-f32 PyTorch-equivalent forward.
    ref_f32 = reference_forward_f32(x, params)
    assert jnp.allclose(out, ref_f32, atol=5e-2, rtol=5e-2), "mismatch vs f32 reference"

    print("KERNEL_OK")
</pallas_src>

<mosaic_0001>
module attributes {stable_mosaic.version = 11 : i64} {
  func.func @_mlp_kernel(%arg0: i32, %arg1: memref<16x16xbf16, #tpu.memory_space<vmem>>, %arg2: memref<16x128xbf16, #tpu.memory_space<vmem>>, %arg3: memref<5x128x128xbf16, #tpu.memory_space<vmem>>, %arg4: memref<6x128xf32, #tpu.memory_space<vmem>>, %arg5: memref<16x128xbf16, #tpu.memory_space<vmem>>) attributes {dimension_semantics = [#tpu.dimension_semantics<parallel>], iteration_bounds = array<i64: 1>, scalar_prefetch = 0 : i64, scratch_operands = 0 : i64, tpu.core_type = #tpu.core_type<tc>, window_params = [{transform_indices = @transform_0, window_bounds = array<i64: 16, 16>}, {pipeline_mode = #tpu.pipeline_mode<synchronous>, transform_indices = @transform_1, window_bounds = array<i64: 16, 128>}, {pipeline_mode = #tpu.pipeline_mode<synchronous>, transform_indices = @transform_2, window_bounds = array<i64: 5, 128, 128>}, {pipeline_mode = #tpu.pipeline_mode<synchronous>, transform_indices = @transform_3, window_bounds = array<i64: 6, 128>}, {transform_indices = @transform_4, window_bounds = array<i64: 16, 128>}]} {
    %c0 = arith.constant 0 : index
    %c0_0 = arith.constant 0 : index
    %0 = vector.load %arg1[%c0, %c0_0] : memref<16x16xbf16, #tpu.memory_space<vmem>>, vector<16x16xbf16>
    %c0_1 = arith.constant 0 : index
    %c0_2 = arith.constant 0 : index
    %1 = vector.load %arg2[%c0_1, %c0_2] : memref<16x128xbf16, #tpu.memory_space<vmem>>, vector<16x128xbf16>
    %cst = arith.constant dense<0.000000e+00> : vector<16x128xf32>
    %2 = tpu.matmul %0, %1, %cst {dimension_numbers = #tpu.dot_dimension_numbers<[1], [0], [0], [1], [0, 0, 1, 1], [], []>} : vector<16x16xbf16>, vector<16x128xbf16>, vector<16x128xf32> -> vector<16x128xf32>
    %c0_3 = arith.constant 0 : index
    %c0_4 = arith.constant 0 : index
    %3 = vector.load %arg4[%c0_3, %c0_4] : memref<6x128xf32, #tpu.memory_space<vmem>>, vector<1x128xf32>
    %4 = vector.shape_cast %3 : vector<1x128xf32> to vector<128xf32>
    %5 = vector.shape_cast %4 : vector<128xf32> to vector<1x128xf32>
    %6 = vector.broadcast %5 : vector<1x128xf32> to vector<16x128xf32>
    %7 = arith.addf %2, %6 : vector<16x128xf32>
    %cst_5 = arith.constant 0.000000e+00 : f32
    %8 = vector.broadcast %cst_5 : f32 to vector<16x128xf32>
    %9 = arith.maximumf %7, %8 : vector<16x128xf32>
    %10 = arith.truncf %9 : vector<16x128xf32> to vector<16x128xbf16>
    %c0_6 = arith.constant 0 : index
    %c0_7 = arith.constant 0 : index
    %c0_8 = arith.constant 0 : index
    %11 = vector.load %arg3[%c0_6, %c0_7, %c0_8] : memref<5x128x128xbf16, #tpu.memory_space<vmem>>, vector<1x128x128xbf16>
    %12 = vector.shape_cast %11 : vector<1x128x128xbf16> to vector<128x128xbf16>
    %cst_9 = arith.constant dense<0.000000e+00> : vector<16x128xf32>
    %13 = tpu.matmul %10, %12, %cst_9 {dimension_numbers = #tpu.dot_dimension_numbers<[1], [0], [0], [1], [0, 0, 1, 1], [], []>} : vector<16x128xbf16>, vector<128x128xbf16>, vector<16x128xf32> -> vector<16x128xf32>
    %c1 = arith.constant 1 : index
    %c0_10 = arith.constant 0 : index
    %14 = vector.load %arg4[%c1, %c0_10] : memref<6x128xf32, #tpu.memory_space<vmem>>, vector<1x128xf32>
    %15 = vector.shape_cast %14 : vector<1x128xf32> to vector<128xf32>
    %16 = vector.shape_cast %15 : vector<128xf32> to vector<1x128xf32>
    %17 = vector.broadcast %16 : vector<1x128xf32> to vector<16x128xf32>
    %18 = arith.addf %13, %17 : vector<16x128xf32>
    %cst_11 = arith.constant 0.000000e+00 : f32
    %19 = vector.broadcast %cst_11 : f32 to vector<16x128xf32>
    %20 = arith.maximumf %18, %19 : vector<16x128xf32>
    %21 = arith.truncf %20 : vector<16x128xf32> to vector<16x128xbf16>
    %c1_12 = arith.constant 1 : index
    %c0_13 = arith.constant 0 : index
    %c0_14 = arith.constant 0 : index
    %22 = vector.load %arg3[%c1_12, %c0_13, %c0_14] : memref<5x128x128xbf16, #tpu.memory_space<vmem>>, vector<1x128x128xbf16>
    %23 = vector.shape_cast %22 : vector<1x128x128xbf16> to vector<128x128xbf16>
    %cst_15 = arith.constant dense<0.000000e+00> : vector<16x128xf32>
    %24 = tpu.matmul %21, %23, %cst_15 {dimension_numbers = #tpu.dot_dimension_numbers<[1], [0], [0], [1], [0, 0, 1, 1], [], []>} : vector<16x128xbf16>, vector<128x128xbf16>, vector<16x128xf32> -> vector<16x128xf32>
    %c2 = arith.constant 2 : index
    %c0_16 = arith.constant 0 : index
    %25 = vector.load %arg4[%c2, %c0_16] : memref<6x128xf32, #tpu.memory_space<vmem>>, vector<1x128xf32>
    %26 = vector.shape_cast %25 : vector<1x128xf32> to vector<128xf32>
    %27 = vector.shape_cast %26 : vector<128xf32> to vector<1x128xf32>
    %28 = vector.broadcast %27 : vector<1x128xf32> to vector<16x128xf32>
    %29 = arith.addf %24, %28 : vector<16x128xf32>
    %cst_17 = arith.constant 0.000000e+00 : f32
    %30 = vector.broadcast %cst_17 : f32 to vector<16x128xf32>
    %31 = arith.maximumf %29, %30 : vector<16x128xf32>
    %32 = arith.truncf %31 : vector<16x128xf32> to vector<16x128xbf16>
    %c2_18 = arith.constant 2 : index
    %c0_19 = arith.constant 0 : index
    %c0_20 = arith.constant 0 : index
    %33 = vector.load %arg3[%c2_18, %c0_19, %c0_20] : memref<5x128x128xbf16, #tpu.memory_space<vmem>>, vector<1x128x128xbf16>
    %34 = vector.shape_cast %33 : vector<1x128x128xbf16> to vector<128x128xbf16>
    %cst_21 = arith.constant dense<0.000000e+00> : vector<16x128xf32>
    %35 = tpu.matmul %32, %34, %cst_21 {dimension_numbers = #tpu.dot_dimension_numbers<[1], [0], [0], [1], [0, 0, 1, 1], [], []>} : vector<16x128xbf16>, vector<128x128xbf16>, vector<16x128xf32> -> vector<16x128xf32>
    %c3 = arith.constant 3 : index
    %c0_22 = arith.constant 0 : index
    %36 = vector.load %arg4[%c3, %c0_22] : memref<6x128xf32, #tpu.memory_space<vmem>>, vector<1x128xf32>
    %37 = vector.shape_cast %36 : vector<1x128xf32> to vector<128xf32>
    %38 = vector.shape_cast %37 : vector<128xf32> to vector<1x128xf32>
    %39 = vector.broadcast %38 : vector<1x128xf32> to vector<16x128xf32>
    %40 = arith.addf %35, %39 : vector<16x128xf32>
    %cst_23 = arith.constant 0.000000e+00 : f32
    %41 = vector.broadcast %cst_23 : f32 to vector<16x128xf32>
    %42 = arith.maximumf %40, %41 : vector<16x128xf32>
    %43 = arith.truncf %42 : vector<16x128xf32> to vector<16x128xbf16>
    %c3_24 = arith.constant 3 : index
    %c0_25 = arith.constant 0 : index
    %c0_26 = arith.constant 0 : index
    %44 = vector.load %arg3[%c3_24, %c0_25, %c0_26] : memref<5x128x128xbf16, #tpu.memory_space<vmem>>, vector<1x128x128xbf16>
    %45 = vector.shape_cast %44 : vector<1x128x128xbf16> to vector<128x128xbf16>
    %cst_27 = arith.constant dense<0.000000e+00> : vector<16x128xf32>
    %46 = tpu.matmul %43, %45, %cst_27 {dimension_numbers = #tpu.dot_dimension_numbers<[1], [0], [0], [1], [0, 0, 1, 1], [], []>} : vector<16x128xbf16>, vector<128x128xbf16>, vector<16x128xf32> -> vector<16x128xf32>
    %c4 = arith.constant 4 : index
    %c0_28 = arith.constant 0 : index
    %47 = vector.load %arg4[%c4, %c0_28] : memref<6x128xf32, #tpu.memory_space<vmem>>, vector<1x128xf32>
    %48 = vector.shape_cast %47 : vector<1x128xf32> to vector<128xf32>
    %49 = vector.shape_cast %48 : vector<128xf32> to vector<1x128xf32>
    %50 = vector.broadcast %49 : vector<1x128xf32> to vector<16x128xf32>
    %51 = arith.addf %46, %50 : vector<16x128xf32>
    %cst_29 = arith.constant 0.000000e+00 : f32
    %52 = vector.broadcast %cst_29 : f32 to vector<16x128xf32>
    %53 = arith.maximumf %51, %52 : vector<16x128xf32>
    %54 = arith.truncf %53 : vector<16x128xf32> to vector<16x128xbf16>
    %c4_30 = arith.constant 4 : index
    %c0_31 = arith.constant 0 : index
    %c0_32 = arith.constant 0 : index
    %55 = vector.load %arg3[%c4_30, %c0_31, %c0_32] : memref<5x128x128xbf16, #tpu.memory_space<vmem>>, vector<1x128x128xbf16>
    %56 = vector.shape_cast %55 : vector<1x128x128xbf16> to vector<128x128xbf16>
    %cst_33 = arith.constant dense<0.000000e+00> : vector<16x128xf32>
    %57 = tpu.matmul %54, %56, %cst_33 {dimension_numbers = #tpu.dot_dimension_numbers<[1], [0], [0], [1], [0, 0, 1, 1], [], []>} : vector<16x128xbf16>, vector<128x128xbf16>, vector<16x128xf32> -> vector<16x128xf32>
    %c5 = arith.constant 5 : index
    %c0_34 = arith.constant 0 : index
    %58 = vector.load %arg4[%c5, %c0_34] : memref<6x128xf32, #tpu.memory_space<vmem>>, vector<1x128xf32>
    %59 = vector.shape_cast %58 : vector<1x128xf32> to vector<128xf32>
    %60 = vector.shape_cast %59 : vector<128xf32> to vector<1x128xf32>
    %61 = vector.broadcast %60 : vector<1x128xf32> to vector<16x128xf32>
    %62 = arith.addf %57, %61 : vector<16x128xf32>
    %63 = arith.truncf %62 : vector<16x128xf32> to vector<16x128xbf16>
    %c0_35 = arith.constant 0 : index
    %c0_36 = arith.constant 0 : index
    %64 = vector.load %arg5[%c0_35, %c0_36] : memref<16x128xbf16, #tpu.memory_space<vmem>>, vector<16x128xbf16>
    tpu.vector_store %arg5[%c0_35, %c0_36], %63 {strides = array<i32>} : memref<16x128xbf16, #tpu.memory_space<vmem>>, vector<16x128xbf16>,
    return
  }
  func.func @transform_0(%arg0: i32) -> (i32, i32) {
    %c0_i32 = arith.constant 0 : i32
    %c0_i32_0 = arith.constant 0 : i32
    return %arg0, %c0_i32 : i32, i32
  }
  func.func @transform_1(%arg0: i32) -> (i32, i32) {
    %c0_i32 = arith.constant 0 : i32
    %c0_i32_0 = arith.constant 0 : i32
    %c0_i32_1 = arith.constant 0 : i32
    return %c0_i32, %c0_i32_0 : i32, i32
  }
  func.func @transform_2(%arg0: i32) -> (i32, i32, i32) {
    %c0_i32 = arith.constant 0 : i32
    %c0_i32_0 = arith.constant 0 : i32
    %c0_i32_1 = arith.constant 0 : i32
    %c0_i32_2 = arith.constant 0 : i32
    return %c0_i32, %c0_i32_0, %c0_i32_1 : i32, i32, i32
  }
  func.func @transform_3(%arg0: i32) -> (i32, i32) {
    %c0_i32 = arith.constant 0 : i32
    %c0_i32_0 = arith.constant 0 : i32
    %c0_i32_1 = arith.constant 0 : i32
    return %c0_i32, %c0_i32_0 : i32, i32
  }
  func.func @transform_4(%arg0: i32) -> (i32, i32) {
    %c0_i32 = arith.constant 0 : i32
    %c0_i32_0 = arith.constant 0 : i32
    return %arg0, %c0_i32 : i32, i32
  }
}

</mosaic_0001>

<bundles_post_ra>
// kernel: tpu_custom_call.1
= control target key start
LH: loop header
LB: loop body
LE: loop exit
PB: predicated region body
PF: predicated region fallthrough
CT: control target
= control target key end

     0   :  { %9 = vsyncpa [#allocation3], 0  ;;  %s1248_s0 = inlined_call_operand.hbm [shape: bf16[16,16], index: 0, kind: input, shape index: {}]   ;;  %s1249_s1 = inlined_call_operand.hbm [shape: bf16[16,128], index: 1, kind: input, shape index: {}]   ;;  %s1250_s2 = inlined_call_operand.hbm [shape: bf16[5,128,128], index: 2, kind: input, shape index: {}]   ;;  %s1251_s3 = inlined_call_operand.vmem [shape: f32[6,128], index: 3, kind: input, shape index: {}]   ;;  %s1252_s4 = inlined_call_operand.hbm [shape: bf16[16,128], index: 4, kind: output, shape index: {}]  }
   0x1   :  { %10 = vsyncpa [#allocation6], 0 }
   0x2   :  { %11 = vsyncpa [#allocation4], 0  ;;  %s1077_s15 = smov [#allocation5]   ;;  %s1078_s17 = smov [#allocation2]  }
   0x3   :  { %s29_s16 = sshll.u32 %s1077_s15, 4  ;;  %s17_s18 = sshll.u32 %s1078_s17, 4  ;;  %s30_s16 = int_to_ptr.vmem [resolvable:$true] %s29_s16  ;;  %s1110_s18 = int_to_ptr.vmem [resolvable:$true] %s17_s18 }
   0x4   :  { %s983_s21 = scalar_lea.hbm %s1249_s1, 128 }
   0x5   :  { %p984_p0 = scmp.ne.s32.totalorder %s1249_s1, %s983_s21  ;;  %p987_p1 = scmp.lt.u32.totalorder %s983_s21, %s1249_s1 }
   0x7   :  { %p989_p2 = pnand %p987_p1, %p984_p0 }
   0x9   :  { %992 = shalt.err (!%p989_p2)
}
   0xa   :  { %s993_s26 = scalar_lea.vmem %s30_s16, 128  ;;  %p998_p4 = scmp.lt.s32.totalorder %s30_s16, %s30_s16 }
   0xb   :  { %p994_p3 = scmp.ne.s32.totalorder %s30_s16, %s993_s26  ;;  %p999_p5 = scmp.lt.s32.totalorder %s993_s26, %s993_s26 }
   0xd   :  { %p1000_p6 = por %p999_p5, %p998_p4 }
   0xf   :  { %p1001_p7 = pnand %p1000_p6, %p994_p3 }
  0x11   :  { %1004 = shalt.err (!%p1001_p7)
}
  0x12   :  { %s1079_s27 = smov 64   ;;  %s1080_s28 = smov 4  }
  0x13   :  { %35 = dma.hbm_to_vmem [thread:$0]  %s1249_s1, 128, %s30_s16, [#allocation6], %s1079_s27, %s1079_s27, %s1080_s28  }
  0x14   :  { %s1005_s7 = scalar_lea.hbm %s1248_s0, 128 }
  0x15   :  { %p1006_p8 = scmp.ne.s32.totalorder %s1248_s0, %s1005_s7  ;;  %p1009_p9 = scmp.lt.u32.totalorder %s1005_s7, %s1248_s0 }
  0x17   :  { %p1011_p10 = pnand %p1009_p9, %p1006_p8 }
  0x19   :  { %1014 = shalt.err (!%p1011_p10)
}
  0x1a   :  { %s1015_s12 = scalar_lea.vmem %s1110_s18, 128  ;;  %p1020_p12 = scmp.lt.s32.totalorder %s1110_s18, %s1110_s18 }
  0x1b   :  { %p1016_p11 = scmp.ne.s32.totalorder %s1110_s18, %s1015_s12  ;;  %p1021_p13 = scmp.lt.s32.totalorder %s1015_s12, %s1015_s12 }
  0x1d   :  { %p1022_p0 = por %p1021_p13, %p1020_p12 }
  0x1f   :  { %p1023_p1 = pnand %p1022_p0, %p1016_p11 }
  0x21   :  { %1026 = shalt.err (!%p1023_p1)
}
  0x22   :  { %23 = dma.hbm_to_vmem [thread:$0]  %s1248_s0, 128, %s1110_s18, [#allocation3], %s1079_s27, %s1079_s27, %s1080_s28  }
  0x23   :  { %s1081_s14 = smov [#allocation7]   ;;  %s1027_s19 = scalar_lea.hbm %s1250_s2, 5120 }
  0x24   :  { %s41_s15 = sshll.u32 %s1081_s14, 4  ;;  %p1028_p2 = scmp.ne.s32.totalorder %s1250_s2, %s1027_s19  ;;  %s42_s15 = int_to_ptr.vmem [resolvable:$true] %s41_s15 }
  0x25   :  { %p1031_p3 = scmp.lt.u32.totalorder %s1027_s19, %s1250_s2 }
  0x27   :  { %p1033_p4 = pnand %p1031_p3, %p1028_p2 }
  0x29   :  { %1036 = shalt.err (!%p1033_p4)
}
  0x2a   :  { %s1037_s24 = scalar_lea.vmem %s42_s15, 5120  ;;  %p1042_p6 = scmp.lt.s32.totalorder %s42_s15, %s42_s15 }
  0x2b   :  { %p1038_p5 = scmp.ne.s32.totalorder %s42_s15, %s1037_s24  ;;  %p1043_p7 = scmp.lt.s32.totalorder %s1037_s24, %s1037_s24 }
  0x2d   :  { %p1044_p8 = por %p1043_p7, %p1042_p6 }
  0x2f   :  { %p1045_p9 = pnand %p1044_p8, %p1038_p5 }
  0x31   :  { %1048 = shalt.err (!%p1045_p9)
}
  0x32   :  { %47 = dma.hbm_to_vmem [thread:$0]  %s1250_s2, 5120, %s42_s15, [#allocation6], %s1079_s27, %s1079_s27, %s1080_s28  }
  0x33   :  { %1071 = dma.done.wait [#allocation3], 128  }
  0x34   :  { %1072 = vsyncadd [#allocation3], 4294967168 }
  0x35   :  { %1073 = dma.done.wait [#allocation6], 5248  }
  0x36   :  { %1074 = vsyncadd [#allocation6], 4294962048  ;;  %v1082_v0 = vmov 0.0   ;;  %vm1083_vm0 = vmmov 0   ;;  %v941_v1 = vld [vmem:[#allocation5] sm:$0xff]   ;;  %v942_v2 = vld [vmem:[#allocation2] sm:$0xff]  }
  0x37   :  { %827 = vmatprep.subr.bf16.mxu0 %v1082_v0  ;;  %829 = vmatprep.mubr.msk.bf16.mxu0 %vm1083_vm0, %v1082_v0  ;;  %vm80_vm1 = vcmask 130048   ;;  %v943_v3 = vld [vmem:[#allocation7] sm:$0xff]   ;;  %v944_v4 = vld [vmem:[#allocation7 + $0x8] sm:$0xff]   ;;  %v945_v5 = vld [vmem:[#allocation7 + $0x10] sm:$0xff]   ;;  %s1084_s12 = smov [#allocation8]  }
  0x38   :  { %833 = vmatprep.subr.bf16.mxu1 %v1082_v0  ;;  %849 = vmatprep.mubr.msk.bf16.mxu1 %vm1083_vm0, %v1082_v0  ;;  %v946_v6 = vld [vmem:[#allocation7 + $0x18] sm:$0xff]   ;;  %v947_v7 = vld [vmem:[#allocation7 + $0x20] sm:$0xff]   ;;  %v948_v8 = vld [vmem:[#allocation7 + $0x28] sm:$0xff]   ;;  %s709_s1 = sshll.u32 %s1084_s12, 4  ;;  %s710_s1 = int_to_ptr.vmem [resolvable:$true] %s709_s1 }
  0x39   :  { %828 = vmatpush3.bf16.msra.mxu0 %v941_v1  ;;  %834 = vmatpush3.bf16.msra.mxu1 %v943_v3  ;;  %v949_v9 = vld [vmem:[#allocation7 + $0x30] sm:$0xff]   ;;  %v950_v10 = vld [vmem:[#allocation7 + $0x38] sm:$0xff]   ;;  %v951_v11 = vld [vmem:[#allocation7 + $0x40] sm:$0xff]   ;;  %s1049_s13 = scalar_lea.vmem %s710_s1, 128  ;;  %p1054_p11 = scmp.lt.s32.totalorder %s710_s1, %s710_s1 }
  0x3a   :  { %853 = vmatprep.subr.bf16.mxu0 %v1082_v0  ;;  %835 = vmatprep.subr.bf16.mxu1 %v1082_v0  ;;  %v952_v12 = vld [vmem:[#allocation7 + $0x48] sm:$0xff]   ;;  %v953_v13 = vld [vmem:[#allocation7 + $0x50] sm:$0xff]   ;;  %v954_v14 = vld [vmem:[#allocation7 + $0x58] sm:$0xff]   ;;  %p1050_p10 = scmp.ne.s32.totalorder %s710_s1, %s1049_s13  ;;  %p1055_p12 = scmp.lt.s32.totalorder %s1049_s13, %s1049_s13 }
  0x3b   :  { %v955_v15 = vld [vmem:[#allocation7 + $0x60] sm:$0xff]   ;;  %v956_v16 = vld [vmem:[#allocation7 + $0x68] sm:$0xff]   ;;  %v722_v17 = vld [vmem:[%s1251_s3] ss:$0 sm:$0xff] }
  0x3c   :  { %830 = vmatmul.mubr.msk.bf16.vlgmr.msra.gmra.mrb[0].mxu0 %vm80_vm1, %v942_v2  ;;  %v957_v27 = vld [vmem:[#allocation7 + $0x70] sm:$0xff]   ;;  %v958_v28 = vld [vmem:[#allocation7 + $0x78] sm:$0xff]   ;;  %v959_v29 = vld [vmem:[#allocation7 + $0x80] sm:$0xff]   ;;  %p1056_p13 = por %p1055_p12, %p1054_p11 }
  0x3d   :  { %869 = vmatprep.mubr.msk.bf16.mxu0 %vm1083_vm0, %v1082_v0  ;;  %836 = vmatpush3.bf16.msra.mxu1 %v944_v4  ;;  %v960_v30 = vld [vmem:[#allocation7 + $0x88] sm:$0xff]   ;;  %v961_v31 = vld [vmem:[#allocation7 + $0x90] sm:$0xff]   ;;  %v962_v32 = vld [vmem:[#allocation7 + $0x98] sm:$0xff]  }
  0x3e   :  { %837 = vmatprep.subr.bf16.mxu1 %v1082_v0  ;;  %854 = vmatpush3.bf16.msra.mxu0 %v951_v11  ;;  %v963_v33 = vld [vmem:[#allocation7 + $0xa0] sm:$0xff]   ;;  %v964_v34 = vld [vmem:[#allocation7 + $0xa8] sm:$0xff]   ;;  %v726_v35 = vld [vmem:[%s1251_s3 + $0x1] ss:$0 sm:$0xff]  ;;  %p1057_p0 = pnand %p1056_p13, %p1050_p10 }
  0x3f   :  { %855 = vmatprep.subr.bf16.mxu0 %v1082_v0  ;;  %v965_v45 = vld [vmem:[#allocation7 + $0xb0] sm:$0xff]   ;;  %v966_v46 = vld [vmem:[#allocation7 + $0xb8] sm:$0xff]   ;;  %v967_v47 = vld [vmem:[#allocation7 + $0xc0] sm:$0xff]  }
  0x40   :  { %v968_v48 = vld [vmem:[#allocation7 + $0xc8] sm:$0xff]   ;;  %v969_v49 = vld [vmem:[#allocation7 + $0xd0] sm:$0xff]   ;;  %v970_v50 = vld [vmem:[#allocation7 + $0xd8] sm:$0xff]  }
  0x41   :  { %838 = vmatpush3.bf16.msra.mxu1 %v945_v5  ;;  %v971_v51 = vld [vmem:[#allocation7 + $0xe0] sm:$0xff]   ;;  %v972_v52 = vld [vmem:[#allocation7 + $0xe8] sm:$0xff]   ;;  %v735_v53 = vld [vmem:[%s1251_s3 + $0x2] ss:$0 sm:$0xff] }
  0x42   :  { %839 = vmatprep.subr.bf16.mxu1 %v1082_v0  ;;  %856 = vmatpush3.bf16.msra.mxu0 %v952_v12  ;;  %v973_v63 = vld [vmem:[#allocation7 + $0xf0] sm:$0xff]   ;;  %v974_v1 = vld [vmem:[#allocation7 + $0xf8] sm:$0xff]   ;;  %v975_v2 = vld [vmem:[#allocation7 + $0x100] sm:$0xff]  }
  0x43   :  { %857 = vmatprep.subr.bf16.mxu0 %v1082_v0  ;;  %v976_v3 = vld [vmem:[#allocation7 + $0x108] sm:$0xff]   ;;  %v977_v4 = vld [vmem:[#allocation7 + $0x110] sm:$0xff]   ;;  %v978_v5 = vld [vmem:[#allocation7 + $0x118] sm:$0xff]  }
  0x45   :  { %840 = vmatpush3.bf16.msra.mxu1 %v946_v6  ;;  %v979_v6 = vld [vmem:[#allocation7 + $0x120] sm:$0xff]  }
  0x46   :  { %841 = vmatprep.subr.bf16.mxu1 %v1082_v0  ;;  %858 = vmatpush3.bf16.msra.mxu0 %v953_v13 }
  0x47   :  { %859 = vmatprep.subr.bf16.mxu0 %v1082_v0 }
  0x49   :  { %842 = vmatpush3.bf16.msra.mxu1 %v947_v7  ;;  %v980_v7 = vld [vmem:[#allocation7 + $0x128] sm:$0xff]  }
  0x4a   :  { %843 = vmatprep.subr.bf16.mxu1 %v1082_v0  ;;  %860 = vmatpush3.bf16.msra.mxu0 %v954_v14 }
  0x4b   :  { %861 = vmatprep.subr.bf16.mxu0 %v1082_v0 }
  0x4d   :  { %844 = vmatpush3.bf16.msra.mxu1 %v948_v8  ;;  %v744_v8 = vld [vmem:[%s1251_s3 + $0x3] ss:$0 sm:$0xff] }
  0x4e   :  { %845 = vmatprep.subr.bf16.mxu1 %v1082_v0  ;;  %862 = vmatpush3.bf16.msra.mxu0 %v955_v15 }
  0x4f   :  { %863 = vmatprep.subr.bf16.mxu0 %v1082_v0 }
  0x51   :  { %846 = vmatpush3.bf16.msra.mxu1 %v949_v9 }
  0x52   :  { %847 = vmatprep.subr.bf16.mxu1 %v1082_v0  ;;  %864 = vmatpush3.bf16.msra.mxu0 %v956_v16 }
  0x53   :  { %865 = vmatprep.subr.bf16.mxu0 %v1082_v0 }
  0x55   :  { %848 = vmatpush3.bf16.msra.mxu1 %v950_v10 }
  0x56   :  { %873 = vmatprep.subr.bf16.mxu1 %v1082_v0  ;;  %866 = vmatpush3.bf16.msra.mxu0 %v957_v27 }
  0x57   :  { %867 = vmatprep.subr.bf16.mxu0 %v1082_v0 }
  0x5a   :  { %868 = vmatpush3.bf16.msra.mxu0 %v958_v28 }
  0x5b   :  { %893 = vmatprep.subr.bf16.mxu0 %v1082_v0 }
 0x10f   :  { %v118_v18 = vpop.f32.mrb[0].mxu0 }
 0x110   :  { %v119_v19 = vadd.f32 %v722_v17, %v118_v18  ;;  %v831_v20 = vpop.f32.mrb[1].mxu0  ;;  %v981_v18 = vld [vmem:[#allocation7 + $0x130] sm:$0xff]  }
 0x111   :  { %v121_v21 = vpop.f32.mrb[2].mxu0  ;;  %v753_v20 = vld [vmem:[%s1251_s3 + $0x4] ss:$0 sm:$0xff] }
 0x112   :  { %v122_v22 = vadd.f32 %v722_v17, %v121_v21  ;;  %v832_v23 = vpop.f32.mrb[3].mxu0  ;;  %v125_v24 = vmax.f32 %v119_v19, 0.0  ;;  %v982_v19 = vld [vmem:[#allocation7 + $0x138] sm:$0xff]  }
 0x114   :  { %v126_v25 = vmax.f32 %v122_v22, 0.0 }
 0x116   :  { %v127_v26 = vpack.c.bf16 %v126_v25, %v125_v24 }
 0x118   :  { %850 = vmatmul.mubr.bf16.vlgmr.msra.gmra.mrb[0].mxu1 %v127_v26 }
 0x119   :  { %889 = vmatprep.mubr.msk.bf16.mxu1 %vm1083_vm0, %v1082_v0  ;;  %874 = vmatpush3.bf16.msra.mxu1 %v959_v29 }
 0x11a   :  { %875 = vmatprep.subr.bf16.mxu1 %v1082_v0 }
 0x11d   :  { %876 = vmatpush3.bf16.msra.mxu1 %v960_v30 }
 0x11e   :  { %877 = vmatprep.subr.bf16.mxu1 %v1082_v0 }
 0x121   :  { %878 = vmatpush3.bf16.msra.mxu1 %v961_v31 }
 0x122   :  { %879 = vmatprep.subr.bf16.mxu1 %v1082_v0 }
 0x125   :  { %880 = vmatpush3.bf16.msra.mxu1 %v962_v32 }
 0x126   :  { %881 = vmatprep.subr.bf16.mxu1 %v1082_v0 }
 0x129   :  { %882 = vmatpush3.bf16.msra.mxu1 %v963_v33 }
 0x12a   :  { %883 = vmatprep.subr.bf16.mxu1 %v1082_v0 }
 0x12d   :  { %884 = vmatpush3.bf16.msra.mxu1 %v964_v34 }
 0x12e   :  { %885 = vmatprep.subr.bf16.mxu1 %v1082_v0 }
 0x131   :  { %886 = vmatpush3.bf16.msra.mxu1 %v965_v45 }
 0x132   :  { %887 = vmatprep.subr.bf16.mxu1 %v1082_v0 }
 0x135   :  { %888 = vmatpush3.bf16.msra.mxu1 %v966_v46 }
 0x136   :  { %913 = vmatprep.subr.bf16.mxu1 %v1082_v0 }
 0x1eb   :  { %v231_v36 = vpop.f32.mrb[0].mxu1 }
 0x1ec   :  { %v232_v37 = vadd.f32 %v726_v35, %v231_v36  ;;  %v851_v38 = vpop.f32.mrb[1].mxu1 }
 0x1ed   :  { %v234_v39 = vpop.f32.mrb[2].mxu1 }
 0x1ee   :  { %v235_v40 = vadd.f32 %v726_v35, %v234_v39  ;;  %v852_v41 = vpop.f32.mrb[3].mxu1  ;;  %v238_v42 = vmax.f32 %v232_v37, 0.0 }
 0x1f0   :  { %v239_v43 = vmax.f32 %v235_v40, 0.0 }
 0x1f2   :  { %v240_v44 = vpack.c.bf16 %v239_v43, %v238_v42 }
 0x1f4   :  { %870 = vmatmul.mubr.bf16.vlgmr.msra.gmra.mrb[4].mxu0 %v240_v44 }
 0x1f5   :  { %909 = vmatprep.mubr.msk.bf16.mxu0 %vm1083_vm0, %v1082_v0  ;;  %894 = vmatpush3.bf16.msra.mxu0 %v967_v47 }
 0x1f6   :  { %895 = vmatprep.subr.bf16.mxu0 %v1082_v0 }
 0x1f9   :  { %896 = vmatpush3.bf16.msra.mxu0 %v968_v48 }
 0x1fa   :  { %897 = vmatprep.subr.bf16.mxu0 %v1082_v0 }
 0x1fd   :  { %898 = vmatpush3.bf16.msra.mxu0 %v969_v49 }
 0x1fe   :  { %899 = vmatprep.subr.bf16.mxu0 %v1082_v0 }
 0x201   :  { %900 = vmatpush3.bf16.msra.mxu0 %v970_v50 }
 0x202   :  { %901 = vmatprep.subr.bf16.mxu0 %v1082_v0 }
 0x205   :  { %902 = vmatpush3.bf16.msra.mxu0 %v971_v51 }
 0x206   :  { %903 = vmatprep.subr.bf16.mxu0 %v1082_v0 }
 0x209   :  { %904 = vmatpush3.bf16.msra.mxu0 %v972_v52 }
 0x20a   :  { %905 = vmatprep.subr.bf16.mxu0 %v1082_v0 }
 0x20d   :  { %906 = vmatpush3.bf16.msra.mxu0 %v973_v63 }
 0x20e   :  { %907 = vmatprep.subr.bf16.mxu0 %v1082_v0 }
 0x211   :  { %908 = vmatpush3.bf16.msra.mxu0 %v974_v1 }
 0x2c7   :  { %v345_v54 = vpop.f32.mrb[4].mxu0 }
 0x2c8   :  { %v346_v55 = vadd.f32 %v735_v53, %v345_v54  ;;  %v871_v56 = vpop.f32.mrb[5].mxu0 }
 0x2c9   :  { %v348_v57 = vpop.f32.mrb[6].mxu0 }
 0x2ca   :  { %v349_v58 = vadd.f32 %v735_v53, %v348_v57  ;;  %v872_v59 = vpop.f32.mrb[7].mxu0  ;;  %v352_v60 = vmax.f32 %v346_v55, 0.0 }
 0x2cc   :  { %v353_v61 = vmax.f32 %v349_v58, 0.0 }
 0x2ce   :  { %v354_v62 = vpack.c.bf16 %v353_v61, %v352_v60 }
 0x2d0   :  { %890 = vmatmul.mubr.bf16.vlgmr.msra.gmra.mrb[4].mxu1 %v354_v62 }
 0x2d1   :  { %929 = vmatprep.mubr.msk.bf16.mxu1 %vm1083_vm0, %v1082_v0  ;;  %914 = vmatpush3.bf16.msra.mxu1 %v975_v2 }
 0x2d2   :  { %915 = vmatprep.subr.bf16.mxu1 %v1082_v0 }
 0x2d5   :  { %916 = vmatpush3.bf16.msra.mxu1 %v976_v3 }
 0x2d6   :  { %917 = vmatprep.subr.bf16.mxu1 %v1082_v0 }
 0x2d9   :  { %918 = vmatpush3.bf16.msra.mxu1 %v977_v4 }
 0x2da   :  { %919 = vmatprep.subr.bf16.mxu1 %v1082_v0 }
 0x2dd   :  { %920 = vmatpush3.bf16.msra.mxu1 %v978_v5 }
 0x2de   :  { %921 = vmatprep.subr.bf16.mxu1 %v1082_v0 }
 0x2e1   :  { %922 = vmatpush3.bf16.msra.mxu1 %v979_v6 }
 0x2e2   :  { %923 = vmatprep.subr.bf16.mxu1 %v1082_v0 }
 0x2e5   :  { %924 = vmatpush3.bf16.msra.mxu1 %v980_v7 }
 0x2e6   :  { %925 = vmatprep.subr.bf16.mxu1 %v1082_v0 }
 0x2e9   :  { %926 = vmatpush3.bf16.msra.mxu1 %v981_v18 }
 0x2ea   :  { %927 = vmatprep.subr.bf16.mxu1 %v1082_v0  ;;  %v762_v0 = vld [vmem:[%s1251_s3 + $0x5] ss:$0 sm:$0xff] }
 0x2ed   :  { %928 = vmatpush3.bf16.msra.mxu1 %v982_v19 }
 0x3a3   :  { %v459_v9 = vpop.f32.mrb[4].mxu1 }
 0x3a4   :  { %v460_v10 = vadd.f32 %v744_v8, %v459_v9  ;;  %v891_v11 = vpop.f32.mrb[5].mxu1 }
 0x3a5   :  { %v462_v12 = vpop.f32.mrb[6].mxu1 }
 0x3a6   :  { %v463_v13 = vadd.f32 %v744_v8, %v462_v12  ;;  %v892_v14 = vpop.f32.mrb[7].mxu1  ;;  %v466_v15 = vmax.f32 %v460_v10, 0.0 }
 0x3a8   :  { %v467_v16 = vmax.f32 %v463_v13, 0.0 }
 0x3aa   :  { %v468_v17 = vpack.c.bf16 %v467_v16, %v466_v15 }
 0x3ac   :  { %910 = vmatmul.mubr.bf16.vlgmr.msra.gmra.mrb[8].mxu0 %v468_v17 }
 0x47f   :  { %v573_v21 = vpop.f32.mrb[8].mxu0 }
 0x480   :  { %v574_v22 = vadd.f32 %v753_v20, %v573_v21  ;;  %v911_v23 = vpop.f32.mrb[9].mxu0 }
 0x481   :  { %v576_v24 = vpop.f32.mrb[10].mxu0 }
 0x482   :  { %v577_v25 = vadd.f32 %v753_v20, %v576_v24  ;;  %v912_v26 = vpop.f32.mrb[11].mxu0  ;;  %v580_v27 = vmax.f32 %v574_v22, 0.0 }
 0x484   :  { %v581_v28 = vmax.f32 %v577_v25, 0.0 }
 0x486   :  { %v582_v29 = vpack.c.bf16 %v581_v28, %v580_v27 }
 0x488   :  { %930 = vmatmul.mubr.bf16.vlgmr.msra.gmra.mrb[8].mxu1 %v582_v29 }
 0x55b   :  { %v687_v30 = vpop.f32.mrb[8].mxu1 }
 0x55c   :  { %v931_v31 = vpop.f32.mrb[9].mxu1  ;;  %v688_v33 = vadd.f32 %v762_v0, %v687_v30 }
 0x55d   :  { %v690_v32 = vpop.f32.mrb[10].mxu1 }
 0x55e   :  { %v691_v34 = vadd.f32 %v762_v0, %v690_v32  ;;  %v932_v35 = vpop.f32.mrb[11].mxu1 }
 0x560   :  { %v778_v36 = vpack.c.bf16 %v691_v34, %v688_v33 }
 0x562   :  { %779 = vst [vmem:[#allocation8] sm:$0xff] %v778_v36  }
 0x563   :  { %1060 = shalt.err (!%p1057_p0)
}
 0x564   :  { %s1061_s15 = scalar_lea.hbm %s1252_s4, 128 }
 0x565   :  { %p1062_p1 = scmp.ne.s32.totalorder %s1252_s4, %s1061_s15  ;;  %p1065_p2 = scmp.lt.u32.totalorder %s1061_s15, %s1252_s4 }
 0x567   :  { %p1067_p3 = pnand %p1065_p2, %p1062_p1 }
 0x569   :  { %1070 = shalt.err (!%p1067_p3)
}
 0x56a   :  { %715 = dma.vmem_to_hbm [thread:$0]  %s710_s1, 128, %s1252_s4, [#allocation4], %s1079_s27, %s1079_s27, %s1080_s28  }
 0x56b   :  { %1075 = dma.done.wait [#allocation4], 128  }
 0x56c   :  { %1076 = vsyncadd [#allocation4], 4294967168 }
 0x56d   :  { %719 = vsyncpa [#allocation3], 1 }
 0x56e   :  { %720 = vsyncpa [#allocation6], 1 }
 0x56f   :  { %721 = vsyncpa [#allocation4], 1 }

</bundles_post_ra>
